<compile_context>
chip_gen: v5e
topology: v5e:2x2
jax: 0.10.0
libtpu: 0.0.40
codegen_flags: <defaults>
</compile_context>

<pallas_src>
import jax
import jax.numpy as jnp
from jax.experimental import pallas as pl
from jax.experimental.pallas import tpu as pltpu


def autoencoder_kernel(x_ref,
                       w1_ref, b1_ref,
                       w2_ref, b2_ref,
                       w3_ref, b3_ref,
                       w4_ref, b4_ref,
                       o_ref):
    """Fused encoder+decoder: 4 bf16 matmuls on the MXU (f32 accumulation),
    bias-add + tanh in f32 on the VPU/EUP."""

    def layer(h_bf16, w_ref, b_ref):
        acc = jnp.dot(h_bf16, w_ref[...], preferred_element_type=jnp.float32)
        return jnp.tanh(acc + b_ref[...])        # f32 bias-add + tanh

    h = layer(x_ref[...], w1_ref, b1_ref)                 # (tile, 2D) f32
    h = layer(h.astype(jnp.bfloat16), w2_ref, b2_ref)     # (tile, E)  f32
    h = layer(h.astype(jnp.bfloat16), w3_ref, b3_ref)     # (tile, 2D) f32
    y = layer(h.astype(jnp.bfloat16), w4_ref, b4_ref)     # (tile, D)  f32
    o_ref[...] = y.astype(o_ref.dtype)                    # bf16 store (fewer masked-store bytes)


def autoencoder_forward(x, params, *, batch_tile=None, out_dtype=jnp.bfloat16):
    """x: (B, input_dim). params: dict of transposed f32 weights + biases.

    Weights are stored as (fan_in, fan_out), so the kernel computes
    y = tanh(x @ W + b), matching PyTorch nn.Linear (x @ W.T + b) semantics.
    """
    B, input_dim = x.shape
    if batch_tile is None:
        # Target large tiles (sweep 512-2048 on real workloads) but keep the
        # grid length >= 2 so the batch axis pipelines and, on v7x, is
        # sharded across both TensorCores.
        batch_tile = min(512, B)
        while batch_tile > 16 and B // batch_tile < 2:
            batch_tile //= 2
    assert B % batch_tile == 0, "batch must be divisible by batch_tile"
    assert batch_tile % 16 == 0, "batch_tile must be a multiple of 16 (bf16 sublane packing)"

    # bf16 I/O: halves per-row HBM traffic; bf16 weights are MXU-native.
    # Biases stay f32 (added after the f32-accumulated matmul).
    bf16 = jnp.bfloat16
    xb = x.astype(bf16)
    w1, b1 = params["w1"].astype(bf16), params["b1"].astype(jnp.float32)   # (D, 2D), (1, 2D)
    w2, b2 = params["w2"].astype(bf16), params["b2"].astype(jnp.float32)   # (2D, E), (1, E)
    w3, b3 = params["w3"].astype(bf16), params["b3"].astype(jnp.float32)   # (E, 2D), (1, 2D)
    w4, b4 = params["w4"].astype(bf16), params["b4"].astype(jnp.float32)   # (2D, D), (1, D)

    # Constant-index blocks: DMA'd once, resident in VMEM for the whole grid.
    full = lambda a: pl.BlockSpec(a.shape, lambda i: (0, 0))

    return pl.pallas_call(
        autoencoder_kernel,
        out_shape=jax.ShapeDtypeStruct((B, input_dim), out_dtype),
        grid_spec=pltpu.PrefetchScalarGridSpec(
            num_scalar_prefetch=0,
            grid=(B // batch_tile,),
            in_specs=[
                pl.BlockSpec((batch_tile, input_dim), lambda i: (i, 0)),
                full(w1), full(b1),
                full(w2), full(b2),
                full(w3), full(b3),
                full(w4), full(b4),
            ],
            out_specs=pl.BlockSpec((batch_tile, input_dim), lambda i: (i, 0)),
        ),
        compiler_params=pltpu.CompilerParams(
            # Single batch axis; independent per tile -> megacore-shardable.
            dimension_semantics=("parallel",)),
    )(xb, w1, b1, w2, b2, w3, b3, w4, b4)


def init_params(key, input_dim, encoding_dim, dtype=jnp.float32):
    """Deterministic init mimicking PyTorch Linear default (U[-1/sqrt(fan_in), +])."""
    hidden = input_dim * 2
    dims = [(input_dim, hidden),     # encoder[0]
            (hidden, encoding_dim),  # encoder[2]
            (encoding_dim, hidden),  # decoder[0]
            (hidden, input_dim)]     # decoder[2]
    params = {}
    for idx, (fan_in, fan_out) in enumerate(dims, start=1):
        key, kw, kb = jax.random.split(key, 3)
        bound = 1.0 / (fan_in ** 0.5)
        # store W already transposed to (fan_in, fan_out)
        params[f"w{idx}"] = jax.random.uniform(
            kw, (fan_in, fan_out), dtype, minval=-bound, maxval=bound)
        params[f"b{idx}"] = jax.random.uniform(
            kb, (1, fan_out), dtype, minval=-bound, maxval=bound)
    return params


def reference_forward(x, params):
    """Pure-JAX reference emulating the kernel's numerics (bf16 matmul inputs,
    f32 accumulation, f32 bias-add + tanh)."""
    bf16 = jnp.bfloat16

    def layer(h, w, b):
        acc = jnp.dot(h.astype(bf16), w.astype(bf16),
                      preferred_element_type=jnp.float32)
        return jnp.tanh(acc + b.astype(jnp.float32))

    h = layer(x, params["w1"], params["b1"])
    h = layer(h, params["w2"], params["b2"])
    h = layer(h, params["w3"], params["b3"])
    return layer(h, params["w4"], params["b4"])


if __name__ == "__main__":
    INPUT_DIM = 32
    ENCODING_DIM = 8
    BATCH = 128   # small, but big enough for a multi-step grid (tile=64 -> grid=(2,))

    key = jax.random.PRNGKey(0)
    key, kx = jax.random.split(key)
    x = jax.random.normal(kx, (BATCH, INPUT_DIM), jnp.float32)
    params = init_params(key, INPUT_DIM, ENCODING_DIM)

    out = autoencoder_forward(x, params)
    out = jax.block_until_ready(out)

    ref = reference_forward(x, params)
    assert out.shape == (BATCH, INPUT_DIM)
    assert out.dtype == jnp.bfloat16
    err = float(jnp.max(jnp.abs(out.astype(jnp.float32) - ref)))
    assert err < 2e-2, f"mismatch vs reference: max abs err {err}"

    print("KERNEL_OK")
</pallas_src>

<mosaic_0001>
module attributes {stable_mosaic.version = 11 : i64} {
  func.func @autoencoder_kernel(%arg0: i32, %arg1: memref<64x32xbf16, #tpu.memory_space<vmem>>, %arg2: memref<32x64xbf16, #tpu.memory_space<vmem>>, %arg3: memref<1x64xf32, #tpu.memory_space<vmem>>, %arg4: memref<64x8xbf16, #tpu.memory_space<vmem>>, %arg5: memref<1x8xf32, #tpu.memory_space<vmem>>, %arg6: memref<8x64xbf16, #tpu.memory_space<vmem>>, %arg7: memref<1x64xf32, #tpu.memory_space<vmem>>, %arg8: memref<64x32xbf16, #tpu.memory_space<vmem>>, %arg9: memref<1x32xf32, #tpu.memory_space<vmem>>, %arg10: memref<64x32xbf16, #tpu.memory_space<vmem>>) attributes {dimension_semantics = [#tpu.dimension_semantics<parallel>], iteration_bounds = array<i64: 2>, scalar_prefetch = 0 : i64, scratch_operands = 0 : i64, tpu.core_type = #tpu.core_type<tc>, window_params = [{transform_indices = @transform_0, window_bounds = array<i64: 64, 32>}, {pipeline_mode = #tpu.pipeline_mode<synchronous>, transform_indices = @transform_1, window_bounds = array<i64: 32, 64>}, {pipeline_mode = #tpu.pipeline_mode<synchronous>, transform_indices = @transform_2, window_bounds = array<i64: 1, 64>}, {pipeline_mode = #tpu.pipeline_mode<synchronous>, transform_indices = @transform_3, window_bounds = array<i64: 64, 8>}, {pipeline_mode = #tpu.pipeline_mode<synchronous>, transform_indices = @transform_4, window_bounds = array<i64: 1, 8>}, {pipeline_mode = #tpu.pipeline_mode<synchronous>, transform_indices = @transform_5, window_bounds = array<i64: 8, 64>}, {pipeline_mode = #tpu.pipeline_mode<synchronous>, transform_indices = @transform_6, window_bounds = array<i64: 1, 64>}, {pipeline_mode = #tpu.pipeline_mode<synchronous>, transform_indices = @transform_7, window_bounds = array<i64: 64, 32>}, {pipeline_mode = #tpu.pipeline_mode<synchronous>, transform_indices = @transform_8, window_bounds = array<i64: 1, 32>}, {transform_indices = @transform_9, window_bounds = array<i64: 64, 32>}]} {
    %c0 = arith.constant 0 : index
    %c0_0 = arith.constant 0 : index
    %0 = vector.load %arg1[%c0, %c0_0] : memref<64x32xbf16, #tpu.memory_space<vmem>>, vector<64x32xbf16>
    %c0_1 = arith.constant 0 : index
    %c0_2 = arith.constant 0 : index
    %1 = vector.load %arg2[%c0_1, %c0_2] : memref<32x64xbf16, #tpu.memory_space<vmem>>, vector<32x64xbf16>
    %cst = arith.constant dense<0.000000e+00> : vector<64x64xf32>
    %2 = tpu.matmul %0, %1, %cst {dimension_numbers = #tpu.dot_dimension_numbers<[1], [0], [0], [1], [0, 0, 1, 1], [], []>} : vector<64x32xbf16>, vector<32x64xbf16>, vector<64x64xf32> -> vector<64x64xf32>
    %c0_3 = arith.constant 0 : index
    %c0_4 = arith.constant 0 : index
    %3 = vector.load %arg3[%c0_3, %c0_4] : memref<1x64xf32, #tpu.memory_space<vmem>>, vector<1x64xf32>
    %4 = vector.broadcast %3 : vector<1x64xf32> to vector<64x64xf32>
    %5 = arith.addf %2, %4 : vector<64x64xf32>
    %6 = math.tanh %5 : vector<64x64xf32>
    %7 = arith.truncf %6 : vector<64x64xf32> to vector<64x64xbf16>
    %c0_5 = arith.constant 0 : index
    %c0_6 = arith.constant 0 : index
    %8 = vector.load %arg4[%c0_5, %c0_6] : memref<64x8xbf16, #tpu.memory_space<vmem>>, vector<64x8xbf16>
    %cst_7 = arith.constant dense<0.000000e+00> : vector<64x8xf32>
    %9 = tpu.matmul %7, %8, %cst_7 {dimension_numbers = #tpu.dot_dimension_numbers<[1], [0], [0], [1], [0, 0, 1, 1], [], []>} : vector<64x64xbf16>, vector<64x8xbf16>, vector<64x8xf32> -> vector<64x8xf32>
    %c0_8 = arith.constant 0 : index
    %c0_9 = arith.constant 0 : index
    %10 = vector.load %arg5[%c0_8, %c0_9] : memref<1x8xf32, #tpu.memory_space<vmem>>, vector<1x8xf32>
    %11 = vector.broadcast %10 : vector<1x8xf32> to vector<64x8xf32>
    %12 = arith.addf %9, %11 : vector<64x8xf32>
    %13 = math.tanh %12 : vector<64x8xf32>
    %14 = arith.truncf %13 : vector<64x8xf32> to vector<64x8xbf16>
    %c0_10 = arith.constant 0 : index
    %c0_11 = arith.constant 0 : index
    %15 = vector.load %arg6[%c0_10, %c0_11] : memref<8x64xbf16, #tpu.memory_space<vmem>>, vector<8x64xbf16>
    %cst_12 = arith.constant dense<0.000000e+00> : vector<64x64xf32>
    %16 = tpu.matmul %14, %15, %cst_12 {dimension_numbers = #tpu.dot_dimension_numbers<[1], [0], [0], [1], [0, 0, 1, 1], [], []>} : vector<64x8xbf16>, vector<8x64xbf16>, vector<64x64xf32> -> vector<64x64xf32>
    %c0_13 = arith.constant 0 : index
    %c0_14 = arith.constant 0 : index
    %17 = vector.load %arg7[%c0_13, %c0_14] : memref<1x64xf32, #tpu.memory_space<vmem>>, vector<1x64xf32>
    %18 = vector.broadcast %17 : vector<1x64xf32> to vector<64x64xf32>
    %19 = arith.addf %16, %18 : vector<64x64xf32>
    %20 = math.tanh %19 : vector<64x64xf32>
    %21 = arith.truncf %20 : vector<64x64xf32> to vector<64x64xbf16>
    %c0_15 = arith.constant 0 : index
    %c0_16 = arith.constant 0 : index
    %22 = vector.load %arg8[%c0_15, %c0_16] : memref<64x32xbf16, #tpu.memory_space<vmem>>, vector<64x32xbf16>
    %cst_17 = arith.constant dense<0.000000e+00> : vector<64x32xf32>
    %23 = tpu.matmul %21, %22, %cst_17 {dimension_numbers = #tpu.dot_dimension_numbers<[1], [0], [0], [1], [0, 0, 1, 1], [], []>} : vector<64x64xbf16>, vector<64x32xbf16>, vector<64x32xf32> -> vector<64x32xf32>
    %c0_18 = arith.constant 0 : index
    %c0_19 = arith.constant 0 : index
    %24 = vector.load %arg9[%c0_18, %c0_19] : memref<1x32xf32, #tpu.memory_space<vmem>>, vector<1x32xf32>
    %25 = vector.broadcast %24 : vector<1x32xf32> to vector<64x32xf32>
    %26 = arith.addf %23, %25 : vector<64x32xf32>
    %27 = math.tanh %26 : vector<64x32xf32>
    %28 = arith.truncf %27 : vector<64x32xf32> to vector<64x32xbf16>
    %c0_20 = arith.constant 0 : index
    %c0_21 = arith.constant 0 : index
    %29 = vector.load %arg10[%c0_20, %c0_21] : memref<64x32xbf16, #tpu.memory_space<vmem>>, vector<64x32xbf16>
    tpu.vector_store %arg10[%c0_20, %c0_21], %28 {strides = array<i32>} : memref<64x32xbf16, #tpu.memory_space<vmem>>, vector<64x32xbf16>,
    return
  }
  func.func @transform_0(%arg0: i32) -> (i32, i32) {
    %c0_i32 = arith.constant 0 : i32
    %c0_i32_0 = arith.constant 0 : i32
    return %arg0, %c0_i32 : i32, i32
  }
  func.func @transform_1(%arg0: i32) -> (i32, i32) {
    %c0_i32 = arith.constant 0 : i32
    %c0_i32_0 = arith.constant 0 : i32
    %c0_i32_1 = arith.constant 0 : i32
    return %c0_i32, %c0_i32_0 : i32, i32
  }
  func.func @transform_2(%arg0: i32) -> (i32, i32) {
    %c0_i32 = arith.constant 0 : i32
    %c0_i32_0 = arith.constant 0 : i32
    %c0_i32_1 = arith.constant 0 : i32
    return %c0_i32, %c0_i32_0 : i32, i32
  }
  func.func @transform_3(%arg0: i32) -> (i32, i32) {
    %c0_i32 = arith.constant 0 : i32
    %c0_i32_0 = arith.constant 0 : i32
    %c0_i32_1 = arith.constant 0 : i32
    return %c0_i32, %c0_i32_0 : i32, i32
  }
  func.func @transform_4(%arg0: i32) -> (i32, i32) {
    %c0_i32 = arith.constant 0 : i32
    %c0_i32_0 = arith.constant 0 : i32
    %c0_i32_1 = arith.constant 0 : i32
    return %c0_i32, %c0_i32_0 : i32, i32
  }
  func.func @transform_5(%arg0: i32) -> (i32, i32) {
    %c0_i32 = arith.constant 0 : i32
    %c0_i32_0 = arith.constant 0 : i32
    %c0_i32_1 = arith.constant 0 : i32
    return %c0_i32, %c0_i32_0 : i32, i32
  }
  func.func @transform_6(%arg0: i32) -> (i32, i32) {
    %c0_i32 = arith.constant 0 : i32
    %c0_i32_0 = arith.constant 0 : i32
    %c0_i32_1 = arith.constant 0 : i32
    return %c0_i32, %c0_i32_0 : i32, i32
  }
  func.func @transform_7(%arg0: i32) -> (i32, i32) {
    %c0_i32 = arith.constant 0 : i32
    %c0_i32_0 = arith.constant 0 : i32
    %c0_i32_1 = arith.constant 0 : i32
    return %c0_i32, %c0_i32_0 : i32, i32
  }
  func.func @transform_8(%arg0: i32) -> (i32, i32) {
    %c0_i32 = arith.constant 0 : i32
    %c0_i32_0 = arith.constant 0 : i32
    %c0_i32_1 = arith.constant 0 : i32
    return %c0_i32, %c0_i32_0 : i32, i32
  }
  func.func @transform_9(%arg0: i32) -> (i32, i32) {
    %c0_i32 = arith.constant 0 : i32
    %c0_i32_0 = arith.constant 0 : i32
    return %arg0, %c0_i32 : i32, i32
  }
}

</mosaic_0001>

<bundles_post_ra>
// kernel: tpu_custom_call.1
= control target key start
LH: loop header
LB: loop body
LE: loop exit
PB: predicated region body
PF: predicated region fallthrough
CT: control target
= control target key end

     0   :  { %s981_s30 = smov 0   ;;  %s1080_s0 = inlined_call_operand.vmem [shape: bf16[128,32], index: 0, kind: input, shape index: {}]   ;;  %s1081_s1 = inlined_call_operand.vmem [shape: bf16[32,64], index: 1, kind: input, shape index: {}]   ;;  %s1082_s2 = inlined_call_operand.vmem [shape: f32[1,64], index: 2, kind: input, shape index: {}]   ;;  %s1083_s3 = inlined_call_operand.vmem [shape: bf16[64,8], index: 3, kind: input, shape index: {}]   ;;  %s1084_s4 = inlined_call_operand.vmem [shape: f32[1,8], index: 4, kind: input, shape index: {}]   ;;  %s1085_s5 = inlined_call_operand.vmem [shape: bf16[8,64], index: 5, kind: input, shape index: {}]   ;;  %s1086_s6 = inlined_call_operand.vmem [shape: f32[1,64], index: 6, kind: input, shape index: {}]   ;;  %s1087_s7 = inlined_call_operand.vmem [shape: bf16[64,32], index: 7, kind: input, shape index: {}]   ;;  %s1088_s8 = inlined_call_operand.vmem [shape: f32[1,32], index: 8, kind: input, shape index: {}]   ;;  %s1089_s9 = inlined_call_operand.vmem [shape: bf16[128,32], index: 9, kind: output, shape index: {}]  }
   0x1 LB: > { %s750_s10 = sadd.s32 4294967295, %s929_s30   ;;  %p754_p0 = scmp.ge.s32.totalorder %s929_s30, 1  ;;  %s929_s30 = sphi %s981_s30, %s19_s30  }
   0x2   : > { %p288_p1 = scmp.lt.s32.totalorder %s929_s30, 3 }
   0x4   : > { %p289_p2 = pnand %p754_p0, %p288_p1 }
   0x5   : > { %s755_s13 = sshll.u32 (!%p289_p2), %s750_s10, 3 }
   0x6   : > { %292 = sbr.rel (%p289_p2) target bundleno = 660 (0x294), region = 56  ;;  %p325_p3 = scmp.lt.s32.totalorder (!%p289_p2), %s755_s13, 15 }
   0xb   : > { %v838_v0 = vld [vmem:[%s1081_s1 + $0x8] sm:$0xff]  ;;  %v837_v1 = vld [vmem:[%s1081_s1] sm:$0xff]  ;;  %s1091_s13 = smov (!%p325_p3, %s755_s13), 15  ;;  %vm385_vm0 = vcmask 261120   ;;  %v842_v6 = vld [vmem:[%s1083_s3 + $0x18] sm:$0xff]  ;;  %vm475_vm1 = vcmask 523264  }
   0xc   : > { %404 = vmatpush.bf16.msra.mxu0 %v838_v0  ;;  %s756_s16 = sshll.u32 %s1091_s13, 2  ;;  %492 = vmatpush.bf16.msra.mxu1 %v842_v6  ;;  %v841_v7 = vld [vmem:[%s1083_s3 + $0x10] sm:$0xff]  ;;  %v840_v8 = vld [vmem:[%s1083_s3 + $0x8] sm:$0xff]  ;;  %v839_v9 = vld [vmem:[%s1083_s3] sm:$0xff]  ;;  %vm547_vm2 = vcmask 1043456   ;;  %vm534_vm3 = vcmask 64512  }
   0xd   : > { %s328_s19 = scalar_lea.vmem %s1080_s0, %s756_s16  ;;  %v855_v11 = vld [vmem:[%s1082_s2] ss:$0 sm:$0xff]  ;;  %v846_v6 = vld [vmem:[%s1087_s7 + $0x18] sm:$0xff]  ;;  %s1059_s10 = scalar_lea.vmem %s1089_s9, %s756_s16  ;;  %vm685_vm4 = vcmask 257024  }
   0xe   : > { %v833_v2 = vld [vmem:[%s328_s19] sm:$0xff]  ;;  %v834_v3 = vld [vmem:[%s328_s19 + $0x8] sm:$0xff]  ;;  %v835_v4 = vld [vmem:[%s328_s19 + $0x10] sm:$0xff]  ;;  %644 = vmatpush.bf16.msra.mxu3 %v846_v6 }
   0xf   : > { %v836_v5 = vld [vmem:[%s328_s19 + $0x18] sm:$0xff]  ;;  %v529_v39 = vld [vmem:[%s1085_s5] sm:$0xf] }
  0x10   : > { %405 = vmatpush.bf16.msra.mxu0 %v837_v1  ;;  %493 = vmatpush.bf16.msra.mxu1 %v841_v7  ;;  %v549_v40 = vsel %vm547_vm2, %v529_v39, 0  ;;  %v856_v42 = vld [vmem:[%s1084_s4] ss:$0 sm:$0xff]  ;;  %v845_v7 = vld [vmem:[%s1087_s7 + $0x10] sm:$0xff] }
  0x11   : > { %558 = vmatpush.bf16.msra.mxu2 %v549_v40  ;;  %v858_v39 = vld [vmem:[%s1088_s8] ss:$0 sm:$0xff] }
  0x12   : > { %645 = vmatpush.bf16.msra.mxu3 %v845_v7 }
  0x13   : > { %783 = vmatmul.msk.bf16.vlgmr.msra.gmra.mxu0 %vm385_vm0, %v833_v2 }
  0x14   : > { %494 = vmatpush.bf16.msra.mxu1 %v840_v8  ;;  %v844_v8 = vld [vmem:[%s1087_s7 + $0x8] sm:$0xff] }
  0x16   : > { %646 = vmatpush.bf16.msra.mxu3 %v844_v8 }
  0x18   : > { %495 = vmatpush.bf16.msra.mxu1 %v839_v9  ;;  %v843_v9 = vld [vmem:[%s1087_s7] sm:$0xff] }
  0x1a   : > { %647 = vmatpush.bf16.msra.mxu3 %v843_v9 }
  0x23   : > { %784 = vmatmul.msk.bf16.gmra.mxu0 %vm385_vm0, %v834_v3 }
  0x33   : > { %785 = vmatmul.msk.bf16.gmra.mxu0 %vm385_vm0, %v835_v4 }
  0x43   : > { %786 = vmatmul.msk.bf16.gmra.mxu0 %vm385_vm0, %v836_v5 }
  0x90   : > { %v407_v10 = vpop.f32.mrf.mxu0 }
  0x91   : > { %v408_v12 = vadd.f32 %v855_v11, %v407_v10 }
  0x93   : > { %859 = vtanh.f32 %v408_v12 }
  0x98   : > { %v409_v13 = vpop.f32.mrf.mxu0 }
  0x99   : > { %v410_v14 = vadd.f32 %v855_v11, %v409_v13  ;;  %v860_v15 = vpop.eup %859 }
  0x9b   : > { %861 = vtanh.f32 %v410_v14 }
  0xa0   : > { %v412_v16 = vpop.f32.mrf.mxu0 }
  0xa1   : > { %v862_v17 = vpop.eup %861  ;;  %v413_v19 = vadd.f32 %v855_v11, %v412_v16 }
  0xa2   : > { %v435_v18 = vpack.c.bf16 %v862_v17, %v860_v15 }
  0xa3   : > { %863 = vtanh.f32 %v413_v19 }
  0xa4   : > { %803 = vmatmul.msk.bf16.vlgmr.msra.gmra.mxu1 %vm475_vm1, %v435_v18 }
  0xa8   : > { %v414_v20 = vpop.f32.mrf.mxu0 }
  0xa9   : > { %v415_v21 = vadd.f32 %v855_v11, %v414_v20  ;;  %v864_v22 = vpop.eup %863 }
  0xab   : > { %865 = vtanh.f32 %v415_v21 }
  0xb0   : > { %v417_v23 = vpop.f32.mrf.mxu0 }
  0xb1   : > { %v866_v24 = vpop.eup %865  ;;  %v418_v26 = vadd.f32 %v855_v11, %v417_v23 }
  0xb2   : > { %v436_v25 = vpack.c.bf16 %v866_v24, %v864_v22 }
  0xb3   : > { %867 = vtanh.f32 %v418_v26 }
  0xb4   : > { %804 = vmatmul.msk.bf16.gmra.mxu1 %vm475_vm1, %v436_v25 }
  0xb8   : > { %v419_v27 = vpop.f32.mrf.mxu0 }
  0xb9   : > { %v420_v28 = vadd.f32 %v855_v11, %v419_v27  ;;  %v868_v29 = vpop.eup %867 }
  0xbb   : > { %869 = vtanh.f32 %v420_v28 }
  0xc0   : > { %v422_v30 = vpop.f32.mrf.mxu0 }
  0xc1   : > { %v870_v31 = vpop.eup %869  ;;  %v423_v33 = vadd.f32 %v855_v11, %v422_v30 }
  0xc2   : > { %v437_v32 = vpack.c.bf16 %v870_v31, %v868_v29 }
  0xc3   : > { %871 = vtanh.f32 %v423_v33 }
  0xc4   : > { %805 = vmatmul.msk.bf16.gmra.mxu1 %vm475_vm1, %v437_v32 }
  0xc8   : > { %v424_v34 = vpop.f32.mrf.mxu0 }
  0xc9   : > { %v425_v35 = vadd.f32 %v855_v11, %v424_v34  ;;  %v872_v36 = vpop.eup %871  ;;  %v857_v11 = vld [vmem:[%s1086_s6] ss:$0 sm:$0xff] }
  0xcb   : > { %873 = vtanh.f32 %v425_v35 }
  0xd1   : > { %v874_v37 = vpop.eup %873 }
  0xd2   : > { %v438_v38 = vpack.c.bf16 %v874_v37, %v872_v36 }
  0xd4   : > { %806 = vmatmul.msk.bf16.gmra.mxu1 %vm475_vm1, %v438_v38 }
 0x121   : > { %v497_v41 = vpop.f32.mrf.mxu1 }
 0x122   : > { %v498_v43 = vadd.f32 %v856_v42, %v497_v41 }
 0x124   : > { %875 = vtanh.f32 %v498_v43 }
 0x129   : > { %v499_v44 = vpop.f32.mrf.mxu1 }
 0x12a   : > { %v500_v45 = vadd.f32 %v856_v42, %v499_v44  ;;  %v876_v46 = vpop.eup %875 }
 0x12c   : > { %877 = vtanh.f32 %v500_v45 }
 0x131   : > { %v502_v47 = vpop.f32.mrf.mxu1 }
 0x132   : > { %v878_v48 = vpop.eup %877  ;;  %v503_v50 = vadd.f32 %v856_v42, %v502_v47 }
 0x133   : > { %v525_v49 = vpack.c.bf16 %v878_v48, %v876_v46 }
 0x134   : > { %879 = vtanh.f32 %v503_v50 }
 0x135   : > { %807 = vmatmul.msk.bf16.vlgmr.msra.gmra.mxu2 %vm534_vm3, %v525_v49 }
 0x139   : > { %v504_v51 = vpop.f32.mrf.mxu1 }
 0x13a   : > { %v505_v52 = vadd.f32 %v856_v42, %v504_v51  ;;  %v880_v53 = vpop.eup %879 }
 0x13c   : > { %881 = vtanh.f32 %v505_v52 }
 0x141   : > { %v507_v54 = vpop.f32.mrf.mxu1 }
 0x142   : > { %v882_v55 = vpop.eup %881  ;;  %v508_v57 = vadd.f32 %v856_v42, %v507_v54 }
 0x143   : > { %v526_v56 = vpack.c.bf16 %v882_v55, %v880_v53 }
 0x144   : > { %883 = vtanh.f32 %v508_v57 }
 0x145   : > { %808 = vmatmul.msk.bf16.gmra.mxu2 %vm534_vm3, %v526_v56 }
 0x149   : > { %v509_v58 = vpop.f32.mrf.mxu1 }
 0x14a   : > { %v510_v59 = vadd.f32 %v856_v42, %v509_v58  ;;  %v884_v60 = vpop.eup %883 }
 0x14c   : > { %885 = vtanh.f32 %v510_v59 }
 0x151   : > { %v512_v61 = vpop.f32.mrf.mxu1 }
 0x152   : > { %v886_v62 = vpop.eup %885  ;;  %v513_v0 = vadd.f32 %v856_v42, %v512_v61 }
 0x153   : > { %v527_v63 = vpack.c.bf16 %v886_v62, %v884_v60 }
 0x154   : > { %887 = vtanh.f32 %v513_v0 }
 0x155   : > { %809 = vmatmul.msk.bf16.gmra.mxu2 %vm534_vm3, %v527_v63 }
 0x159   : > { %v514_v1 = vpop.f32.mrf.mxu1 }
 0x15a   : > { %v515_v2 = vadd.f32 %v856_v42, %v514_v1  ;;  %v888_v3 = vpop.eup %887 }
 0x15c   : > { %889 = vtanh.f32 %v515_v2 }
 0x162   : > { %v890_v4 = vpop.eup %889 }
 0x163   : > { %v528_v5 = vpack.c.bf16 %v890_v4, %v888_v3 }
 0x165   : > { %810 = vmatmul.msk.bf16.gmra.mxu2 %vm534_vm3, %v528_v5 }
 0x1b8   : > { %v560_v10 = vpop.f32.mrf.mxu2 }
 0x1b9   : > { %v561_v12 = vadd.f32 %v857_v11, %v560_v10 }
 0x1bb   : > { %891 = vtanh.f32 %v561_v12 }
 0x1c0   : > { %v562_v13 = vpop.f32.mrf.mxu2 }
 0x1c1   : > { %v563_v14 = vadd.f32 %v857_v11, %v562_v13  ;;  %v892_v15 = vpop.eup %891 }
 0x1c3   : > { %893 = vtanh.f32 %v563_v14 }
 0x1c8   : > { %v565_v16 = vpop.f32.mrf.mxu2 }
 0x1c9   : > { %v894_v17 = vpop.eup %893  ;;  %v566_v19 = vadd.f32 %v857_v11, %v565_v16 }
 0x1ca   : > { %v588_v18 = vpack.c.bf16 %v894_v17, %v892_v15 }
 0x1cb   : > { %895 = vtanh.f32 %v566_v19 }
 0x1cc   : > { %827 = vmatmul.msk.bf16.vlgmr.msra.gmra.mxu3 %vm475_vm1, %v588_v18 }
 0x1d0   : > { %v567_v20 = vpop.f32.mrf.mxu2 }
 0x1d1   : > { %v568_v21 = vadd.f32 %v857_v11, %v567_v20  ;;  %v896_v22 = vpop.eup %895 }
 0x1d3   : > { %897 = vtanh.f32 %v568_v21 }
 0x1d8   : > { %v570_v23 = vpop.f32.mrf.mxu2 }
 0x1d9   : > { %v898_v24 = vpop.eup %897  ;;  %v571_v26 = vadd.f32 %v857_v11, %v570_v23 }
 0x1da   : > { %v589_v25 = vpack.c.bf16 %v898_v24, %v896_v22 }
 0x1db   : > { %899 = vtanh.f32 %v571_v26 }
 0x1dc   : > { %828 = vmatmul.msk.bf16.gmra.mxu3 %vm475_vm1, %v589_v25 }
 0x1e0   : > { %v572_v27 = vpop.f32.mrf.mxu2 }
 0x1e1   : > { %v573_v28 = vadd.f32 %v857_v11, %v572_v27  ;;  %v900_v29 = vpop.eup %899 }
 0x1e3   : > { %901 = vtanh.f32 %v573_v28 }
 0x1e8   : > { %v575_v30 = vpop.f32.mrf.mxu2 }
 0x1e9   : > { %v902_v31 = vpop.eup %901  ;;  %v576_v33 = vadd.f32 %v857_v11, %v575_v30 }
 0x1ea   : > { %v590_v32 = vpack.c.bf16 %v902_v31, %v900_v29 }
 0x1eb   : > { %903 = vtanh.f32 %v576_v33 }
 0x1ec   : > { %829 = vmatmul.msk.bf16.gmra.mxu3 %vm475_vm1, %v590_v32 }
 0x1f0   : > { %v577_v34 = vpop.f32.mrf.mxu2 }
 0x1f1   : > { %v578_v35 = vadd.f32 %v857_v11, %v577_v34  ;;  %v904_v36 = vpop.eup %903 }
 0x1f3   : > { %905 = vtanh.f32 %v578_v35 }
 0x1f9   : > { %v906_v37 = vpop.eup %905 }
 0x1fa   : > { %v591_v38 = vpack.c.bf16 %v906_v37, %v904_v36 }
 0x1fc   : > { %830 = vmatmul.msk.bf16.gmra.mxu3 %vm475_vm1, %v591_v38 }
 0x24f   : > { %v649_v40 = vpop.f32.mrf.mxu3 }
 0x250   : > { %v650_v41 = vadd.f32 %v858_v39, %v649_v40 }
 0x252   : > { %907 = vtanh.f32 %v650_v41 }
 0x257   : > { %v651_v42 = vpop.f32.mrf.mxu3 }
 0x258   : > { %v908_v43 = vpop.eup %907  ;;  %v652_v44 = vadd.f32 %v858_v39, %v651_v42 }
 0x259   : > { %v677_v45 = vpack.c.bf16 %v908_v43, %v908_v43 }
 0x25a   : > { %909 = vtanh.f32 %v652_v44 }
 0x25b   : > { %686 = vst.msk [vmem:[%s1059_s10] sm:$0xf] %vm685_vm4, %v677_v45 }
 0x25f   : > { %v654_v46 = vpop.f32.mrf.mxu3 }
 0x260   : > { %v910_v47 = vpop.eup %909  ;;  %v655_v48 = vadd.f32 %v858_v39, %v654_v46 }
 0x261   : > { %v678_v49 = vpack.c.bf16 %v910_v47, %v910_v47 }
 0x262   : > { %911 = vtanh.f32 %v655_v48 }
 0x263   : > { %687 = vst.msk [vmem:[%s1059_s10 + $0x4] sm:$0xf] %vm685_vm4, %v678_v49 }
 0x267   : > { %v656_v50 = vpop.f32.mrf.mxu3 }
 0x268   : > { %v912_v51 = vpop.eup %911  ;;  %v657_v52 = vadd.f32 %v858_v39, %v656_v50 }
 0x269   : > { %v679_v53 = vpack.c.bf16 %v912_v51, %v912_v51 }
 0x26a   : > { %913 = vtanh.f32 %v657_v52 }
 0x26b   : > { %688 = vst.msk [vmem:[%s1059_s10 + $0x8] sm:$0xf] %vm685_vm4, %v679_v53 }
 0x26f   : > { %v659_v54 = vpop.f32.mrf.mxu3 }
 0x270   : > { %v914_v55 = vpop.eup %913  ;;  %v660_v56 = vadd.f32 %v858_v39, %v659_v54 }
 0x271   : > { %v680_v57 = vpack.c.bf16 %v914_v55, %v914_v55 }
 0x272   : > { %915 = vtanh.f32 %v660_v56 }
 0x273   : > { %689 = vst.msk [vmem:[%s1059_s10 + $0xc] sm:$0xf] %vm685_vm4, %v680_v57 }
 0x277   : > { %v661_v58 = vpop.f32.mrf.mxu3 }
 0x278   : > { %v916_v59 = vpop.eup %915  ;;  %v662_v60 = vadd.f32 %v858_v39, %v661_v58 }
 0x279   : > { %v681_v61 = vpack.c.bf16 %v916_v59, %v916_v59 }
 0x27a   : > { %917 = vtanh.f32 %v662_v60 }
 0x27b   : > { %690 = vst.msk [vmem:[%s1059_s10 + $0x10] sm:$0xf] %vm685_vm4, %v681_v61 }
 0x27f   : > { %v664_v62 = vpop.f32.mrf.mxu3 }
 0x280   : > { %v918_v63 = vpop.eup %917  ;;  %v665_v0 = vadd.f32 %v858_v39, %v664_v62 }
 0x281   : > { %v682_v1 = vpack.c.bf16 %v918_v63, %v918_v63 }
 0x282   : > { %919 = vtanh.f32 %v665_v0 }
 0x283   : > { %691 = vst.msk [vmem:[%s1059_s10 + $0x14] sm:$0xf] %vm685_vm4, %v682_v1 }
 0x287   : > { %v666_v2 = vpop.f32.mrf.mxu3 }
 0x288   : > { %v920_v3 = vpop.eup %919  ;;  %v667_v4 = vadd.f32 %v858_v39, %v666_v2 }
 0x289   : > { %v683_v5 = vpack.c.bf16 %v920_v3, %v920_v3 }
 0x28a   : > { %921 = vtanh.f32 %v667_v4 }
 0x28b   : > { %692 = vst.msk [vmem:[%s1059_s10 + $0x18] sm:$0xf] %vm685_vm4, %v683_v5 }
 0x290   : > { %v922_v6 = vpop.eup %921 }
 0x291   : > { %v684_v7 = vpack.c.bf16 %v922_v6, %v922_v6 }
 0x293   : > { %693 = vst.msk [vmem:[%s1059_s10 + $0x1c] sm:$0xf] %vm685_vm4, %v684_v7 }
 0x294 PF: > { %s19_s30 = sadd.s32 1, %s929_s30  }
 0x295   : > { %p16_p4 = scmp.ge.s32.totalorder %s19_s30, 4  }
 0x297   :  { %18 = sbr.rel (!%p16_p4) target bundleno = 1 (0x1), region = 86 }

</bundles_post_ra>
